<compile_context>
chip_gen: v5e
topology: v5e:2x2
jax: 0.10.0
libtpu: 0.0.40
codegen_flags: <defaults>
</compile_context>

<pallas_src>
import functools

import jax
import jax.numpy as jnp
from jax.experimental import pallas as pl
from jax.experimental.pallas import tpu as pltpu

_LANES = 128
_MAX_BLOCK_ROWS = 64       # 64 x 128 = 8192 samples per grid step
_RISK_PAD = -1e30          # exp(_RISK_PAD) == 0.0 exactly in f32


def _neg_log_likelihood_kernel(risk_ref, e_ref, out_ref, acc_ref, *, block_rows):
    """One grid step processes a lane-dense (block_rows, 128) tile.

    acc_ref (SMEM, (3,) f32):
      [0] running cumulative-sum carry (sum of hazard over all previous tiles)
      [1] running sum of censored likelihood
      [2] running sum of event indicators
    """
    step = pl.program_id(0)

    @pl.when(step == 0)
    def _():
        acc_ref[0] = 0.0
        acc_ref[1] = 0.0
        acc_ref[2] = 0.0

    risk = risk_ref[...]                              # (BR, 128) f32
    e = e_ref[...]                                    # (BR, 128) f32

    hazard = jnp.exp(risk)                            # padded entries -> exactly 0

    # Within-row inclusive prefix sums via an in-kernel (128,128) upper-tri constant:
    # prefix[r, j] = sum_{k<=j} hazard[r, k]
    row_ids = jax.lax.broadcasted_iota(jnp.int32, (_LANES, _LANES), 0)
    col_ids = jax.lax.broadcasted_iota(jnp.int32, (_LANES, _LANES), 1)
    tri_upper = (row_ids <= col_ids).astype(jnp.float32)            # (128, 128)
    prefix = jnp.dot(hazard, tri_upper, preferred_element_type=jnp.float32)

    carry = acc_ref[0]

    if block_rows > 1:
        # Exclusive per-row offsets inside the block: offsets[r] = sum_{r'<r} totals[r'].
        totals = jnp.sum(hazard, axis=1, keepdims=True)             # (BR, 1)
        r_ids = jax.lax.broadcasted_iota(jnp.int32, (block_rows, block_rows), 0)
        c_ids = jax.lax.broadcasted_iota(jnp.int32, (block_rows, block_rows), 1)
        tri_strict = (r_ids > c_ids).astype(jnp.float32)            # (BR, BR)
        row_offsets = jnp.dot(tri_strict, totals,
                              preferred_element_type=jnp.float32)   # (BR, 1)
        cum = prefix + row_offsets + carry
    else:
        cum = prefix + carry

    # TODO(synk): log(cumsum(exp(risk))) matches the PyTorch module exactly but overflows
    # for risk >~ 88; a max-subtracted (log-sum-exp) formulation would be more robust.
    log_risk = jnp.log(cum)
    censored = (risk - log_risk) * e                  # padded entries contribute 0 (e == 0)

    acc_ref[0] = carry + jnp.sum(hazard)
    acc_ref[1] = acc_ref[1] + jnp.sum(censored)
    acc_ref[2] = acc_ref[2] + jnp.sum(e)

    @pl.when(step == pl.num_programs(0) - 1)
    def _():
        out_ref[0, 0] = -(acc_ref[1] / acc_ref[2])


def neg_log_likelihood(prediction, targets):
    """prediction: (N, 1) or (N,) float; targets: (N,) event indicators. Returns scalar f32."""
    n = prediction.shape[0]
    risk = prediction.astype(jnp.float32).reshape(n)
    e = targets.astype(jnp.float32).reshape(n)

    rows = max(1, -(-n // _LANES))                    # ceil(n / 128)
    block_rows = min(_MAX_BLOCK_ROWS, rows)           # multiple of 8 when multi-block
    num_blocks = -(-rows // block_rows)
    rows_pad = num_blocks * block_rows
    n_pad = rows_pad * _LANES

    risk_p = jnp.full((n_pad,), _RISK_PAD, dtype=jnp.float32).at[:n].set(risk)
    e_p = jnp.zeros((n_pad,), dtype=jnp.float32).at[:n].set(e)
    risk2d = risk_p.reshape(rows_pad, _LANES)         # lane-dense layout
    e2d = e_p.reshape(rows_pad, _LANES)

    kernel = functools.partial(_neg_log_likelihood_kernel, block_rows=block_rows)

    out = pl.pallas_call(
        kernel,
        out_shape=jax.ShapeDtypeStruct((1, 1), jnp.float32),
        grid=(num_blocks,),
        in_specs=[
            pl.BlockSpec((block_rows, _LANES), lambda i: (i, 0)),
            pl.BlockSpec((block_rows, _LANES), lambda i: (i, 0)),
        ],
        out_specs=pl.BlockSpec(memory_space=pltpu.MemorySpace.SMEM),
        scratch_shapes=[pltpu.SMEM((3,), jnp.float32)],
        compiler_params=pltpu.CompilerParams(
            dimension_semantics=("arbitrary",)),      # sequential prefix dependency
        cost_estimate=pl.CostEstimate(
            flops=2 * n_pad * _LANES,
            transcendentals=2 * n_pad,
            bytes_accessed=8 * n_pad),
    )(risk2d, e2d)
    return out[0, 0]


def _reference(prediction, targets):
    risk = prediction.astype(jnp.float32)
    e = targets.astype(jnp.float32)
    hazard = jnp.exp(risk)
    log_risk = jnp.log(jnp.cumsum(hazard, axis=0))
    uncens = risk - log_risk                          # (N, 1)
    cens = uncens.T * e                               # (1, N) * (N,) -> (1, N)
    return -jnp.sum(cens) / jnp.sum(e)


if __name__ == "__main__":
    key = jax.random.PRNGKey(0)
    k1, k2 = jax.random.split(key)

    N = 8  # seq of 8 samples (sorted-by-survival-time convention of the Cox loss)
    prediction = jax.random.normal(k1, (N, 1), dtype=jnp.float32)
    targets = (jax.random.uniform(k2, (N,)) > 0.3).astype(jnp.float32)
    targets = targets.at[0].set(1.0)  # ensure at least one observed event

    loss = neg_log_likelihood(prediction, targets)
    loss = jax.block_until_ready(loss)

    ref = _reference(prediction, targets)
    assert jnp.allclose(loss, ref, rtol=1e-5, atol=1e-5), (loss, ref)

    print("KERNEL_OK")
</pallas_src>

<mosaic_0001>
module attributes {stable_mosaic.version = 11 : i64} {
  func.func @_neg_log_likelihood_kernel(%arg0: i32, %arg1: memref<1x128xf32, #tpu.memory_space<vmem>>, %arg2: memref<1x128xf32, #tpu.memory_space<vmem>>, %arg3: memref<1x1xf32, #tpu.memory_space<smem>>, %arg4: memref<3xf32, #tpu.memory_space<smem>>) attributes {dimension_semantics = [#tpu.dimension_semantics<arbitrary>], iteration_bounds = array<i64: 1>, scalar_prefetch = 0 : i64, scratch_operands = 1 : i64, tpu.core_type = #tpu.core_type<tc>, window_params = [{transform_indices = @transform_0, window_bounds = array<i64: 1, 128>}, {transform_indices = @transform_1, window_bounds = array<i64: 1, 128>}, {transform_indices = @transform_2, window_bounds = array<i64: 1, 1>}]} {
    %c0_i32 = arith.constant 0 : i32
    %0 = arith.cmpi eq, %arg0, %c0_i32 : i32
    %1 = arith.extui %0 : i1 to i32
    %c0_i32_0 = arith.constant 0 : i32
    %2 = arith.cmpi ne, %1, %c0_i32_0 : i32
    scf.if %2 {
      %cst_13 = arith.constant 0.000000e+00 : f32
      %c0_14 = arith.constant 0 : index
      %41 = memref.load %arg4[%c0_14] : memref<3xf32, #tpu.memory_space<smem>>
      memref.store %cst_13, %arg4[%c0_14] : memref<3xf32, #tpu.memory_space<smem>>
      %cst_15 = arith.constant 0.000000e+00 : f32
      %c1_16 = arith.constant 1 : index
      %42 = memref.load %arg4[%c1_16] : memref<3xf32, #tpu.memory_space<smem>>
      memref.store %cst_15, %arg4[%c1_16] : memref<3xf32, #tpu.memory_space<smem>>
      %cst_17 = arith.constant 0.000000e+00 : f32
      %c2_18 = arith.constant 2 : index
      %43 = memref.load %arg4[%c2_18] : memref<3xf32, #tpu.memory_space<smem>>
      memref.store %cst_17, %arg4[%c2_18] : memref<3xf32, #tpu.memory_space<smem>>
    } else {
    }
    %c0 = arith.constant 0 : index
    %c0_1 = arith.constant 0 : index
    %3 = vector.load %arg1[%c0, %c0_1] : memref<1x128xf32, #tpu.memory_space<vmem>>, vector<1x128xf32>
    %c0_2 = arith.constant 0 : index
    %c0_3 = arith.constant 0 : index
    %4 = vector.load %arg2[%c0_2, %c0_3] : memref<1x128xf32, #tpu.memory_space<vmem>>, vector<1x128xf32>
    %5 = math.exp %3 : vector<1x128xf32>
    %6 = tpu.iota {dimensions = array<i32: 0>} : vector<128x128xi32>
    %7 = tpu.iota {dimensions = array<i32: 1>} : vector<128x128xi32>
    %8 = arith.cmpi sle, %6, %7 : vector<128x128xi32>
    %9 = arith.extui %8 : vector<128x128xi1> to vector<128x128xi32>
    %10 = arith.sitofp %9 : vector<128x128xi32> to vector<128x128xf32>
    %cst = arith.constant dense<0.000000e+00> : vector<1x128xf32>
    %11 = tpu.matmul %5, %10, %cst {dimension_numbers = #tpu.dot_dimension_numbers<[1], [0], [0], [1], [0, 0, 1, 1], [], []>} : vector<1x128xf32>, vector<128x128xf32>, vector<1x128xf32> -> vector<1x128xf32>
    %c0_4 = arith.constant 0 : index
    %12 = memref.load %arg4[%c0_4] : memref<3xf32, #tpu.memory_space<smem>>
    %13 = vector.broadcast %12 : f32 to vector<1x128xf32>
    %14 = arith.addf %11, %13 : vector<1x128xf32>
    %15 = math.log %14 : vector<1x128xf32>
    %16 = arith.subf %3, %15 : vector<1x128xf32>
    %17 = arith.mulf %16, %4 : vector<1x128xf32>
    %18 = vector.shape_cast %5 : vector<1x128xf32> to vector<1x1x128xf32>
    %cst_5 = arith.constant dense<0.000000e+00> : vector<1xf32>
    %19 = vector.multi_reduction <add>, %18, %cst_5 [1, 2] : vector<1x1x128xf32> to vector<1xf32>
    %20 = vector.shape_cast %19 : vector<1xf32> to vector<1x1x1xf32>
    %21 = vector.extract %20[0, 0, 0] : f32 from vector<1x1x1xf32>
    %22 = arith.addf %12, %21 : f32
    %c0_6 = arith.constant 0 : index
    %23 = memref.load %arg4[%c0_6] : memref<3xf32, #tpu.memory_space<smem>>
    memref.store %22, %arg4[%c0_6] : memref<3xf32, #tpu.memory_space<smem>>
    %c1 = arith.constant 1 : index
    %24 = memref.load %arg4[%c1] : memref<3xf32, #tpu.memory_space<smem>>
    %25 = vector.shape_cast %17 : vector<1x128xf32> to vector<1x1x128xf32>
    %cst_7 = arith.constant dense<0.000000e+00> : vector<1xf32>
    %26 = vector.multi_reduction <add>, %25, %cst_7 [1, 2] : vector<1x1x128xf32> to vector<1xf32>
    %27 = vector.shape_cast %26 : vector<1xf32> to vector<1x1x1xf32>
    %28 = vector.extract %27[0, 0, 0] : f32 from vector<1x1x1xf32>
    %29 = arith.addf %24, %28 : f32
    %c1_8 = arith.constant 1 : index
    %30 = memref.load %arg4[%c1_8] : memref<3xf32, #tpu.memory_space<smem>>
    memref.store %29, %arg4[%c1_8] : memref<3xf32, #tpu.memory_space<smem>>
    %c2 = arith.constant 2 : index
    %31 = memref.load %arg4[%c2] : memref<3xf32, #tpu.memory_space<smem>>
    %32 = vector.shape_cast %4 : vector<1x128xf32> to vector<1x1x128xf32>
    %cst_9 = arith.constant dense<0.000000e+00> : vector<1xf32>
    %33 = vector.multi_reduction <add>, %32, %cst_9 [1, 2] : vector<1x1x128xf32> to vector<1xf32>
    %34 = vector.shape_cast %33 : vector<1xf32> to vector<1x1x1xf32>
    %35 = vector.extract %34[0, 0, 0] : f32 from vector<1x1x1xf32>
    %36 = arith.addf %31, %35 : f32
    %c2_10 = arith.constant 2 : index
    %37 = memref.load %arg4[%c2_10] : memref<3xf32, #tpu.memory_space<smem>>
    memref.store %36, %arg4[%c2_10] : memref<3xf32, #tpu.memory_space<smem>>
    %c0_i32_11 = arith.constant 0 : i32
    %38 = arith.cmpi eq, %arg0, %c0_i32_11 : i32
    %39 = arith.extui %38 : i1 to i32
    %c0_i32_12 = arith.constant 0 : i32
    %40 = arith.cmpi ne, %39, %c0_i32_12 : i32
    scf.if %40 {
      %c1_13 = arith.constant 1 : index
      %41 = memref.load %arg4[%c1_13] : memref<3xf32, #tpu.memory_space<smem>>
      %c2_14 = arith.constant 2 : index
      %42 = memref.load %arg4[%c2_14] : memref<3xf32, #tpu.memory_space<smem>>
      %43 = arith.divf %41, %42 : f32
      %cst_15 = arith.constant 0.000000e+00 : f32
      %44 = arith.subf %cst_15, %43 : f32
      %c0_16 = arith.constant 0 : index
      %c0_17 = arith.constant 0 : index
      %45 = memref.load %arg3[%c0_16, %c0_17] : memref<1x1xf32, #tpu.memory_space<smem>>
      memref.store %44, %arg3[%c0_16, %c0_17] : memref<1x1xf32, #tpu.memory_space<smem>>
    } else {
    }
    return
  }
  func.func @transform_0(%arg0: i32) -> (i32, i32) {
    %c0_i32 = arith.constant 0 : i32
    %c0_i32_0 = arith.constant 0 : i32
    return %arg0, %c0_i32 : i32, i32
  }
  func.func @transform_1(%arg0: i32) -> (i32, i32) {
    %c0_i32 = arith.constant 0 : i32
    %c0_i32_0 = arith.constant 0 : i32
    return %arg0, %c0_i32 : i32, i32
  }
  func.func @transform_2(%arg0: i32) -> (i32, i32) {
    %c0_i32 = arith.constant 0 : i32
    %c0_i32_0 = arith.constant 0 : i32
    %c0_i32_1 = arith.constant 0 : i32
    return %c0_i32, %c0_i32_0 : i32, i32
  }
}

</mosaic_0001>

<bundles_post_ra>
// kernel: tpu_custom_call.1
= control target key start
LH: loop header
LB: loop body
LE: loop exit
PB: predicated region body
PF: predicated region fallthrough
CT: control target
= control target key end

     0   :  { %7 = vsyncpa [#allocation4], 0  ;;  %s377_s0 = inlined_call_operand.hbm [shape: f32[1,128], index: 0, kind: input, shape index: {}]   ;;  %s378_s1 = inlined_call_operand.hbm [shape: f32[1,128], index: 1, kind: input, shape index: {}]   ;;  %s379_s2 = inlined_call_operand.hbm [shape: f32[1,1], index: 2, kind: output, shape index: {}]  }
   0x1   :  { %8 = vsyncpa [#allocation7], 0 }
   0x2   :  { %9 = vsyncpa [#allocation5], 0  ;;  %s15_s11 = sshll.u32 %s377_s0, 4  ;;  %s349_s12 = smov [#allocation3]   ;;  %s16_s11 = int_to_ptr.hbm [resolvable:$true] %s15_s11 }
   0x3   :  { %s17_s13 = sshll.u32 %s349_s12, 4  ;;  %s26_s16 = sshll.u32 %s378_s1, 4  ;;  %s18_s13 = int_to_ptr.vmem [resolvable:$true] %s17_s13  ;;  %s27_s16 = int_to_ptr.hbm [resolvable:$true] %s26_s16 }
   0x4   :  { %20 = dma.hbm_to_vmem [thread:$0]  %s16_s11, 16, %s18_s13, [#allocation4]  }
   0x5   :  { %s350_s17 = smov [#allocation6]  }
   0x6   :  { %s28_s18 = sshll.u32 %s350_s17, 4  ;;  %s29_s18 = int_to_ptr.vmem [resolvable:$true] %s28_s18 }
   0x7   :  { %31 = dma.hbm_to_vmem [thread:$0]  %s27_s16, 16, %s29_s18, [#allocation7]  }
   0x8   :  { %343 = dma.done.wait [#allocation4], 16  }
   0x9   :  { %344 = vsyncadd [#allocation4], 4294967280  ;;  %v54_v0 = vlaneseq }
   0xa   :  { %345 = dma.done.wait [#allocation7], 16  }
   0xb   :  { %346 = vsyncadd [#allocation7], 4294967280  ;;  %v55_v1 = vshrl.u32 %v54_v0, 7  ;;  %v72_v2 = vand.u32 127, %v54_v0  ;;  %v351_v7 = vmov 1.0   ;;  %s219_s21 = sshll.u32 %s379_s2, 4  ;;  %s220_s21 = int_to_ptr.hbm [resolvable:$true] %s219_s21 }
   0xc   :  { %v50_v16 = vld [vmem:[#allocation3] sm:$0x1]  ;;  %v51_v25 = vld [vmem:[#allocation6] sm:$0x1]  ;;  %s352_s25 = smov [#allocation8]  }
   0xd   :  { %v70_v3 = vadd.s32 120, %v55_v1  ;;  %v69_v4 = vadd.s32 112, %v55_v1  ;;  %v68_v5 = vadd.s32 104, %v55_v1  ;;  %v67_v6 = vadd.s32 96, %v55_v1 }
   0xe   :  { %v66_v8 = vadd.s32 88, %v55_v1  ;;  %v65_v9 = vadd.s32 80, %v55_v1  ;;  %v64_v10 = vadd.s32 72, %v55_v1  ;;  %v63_v11 = vadd.s32 64, %v55_v1 }
   0xf   :  { %vm88_vm0 = vcmp.le.s32.totalorder %v70_v3, %v72_v2  ;;  %vm87_vm1 = vcmp.le.s32.totalorder %v69_v4, %v72_v2  ;;  %vm86_vm2 = vcmp.le.s32.totalorder %v68_v5, %v72_v2  ;;  %vm85_vm3 = vcmp.le.s32.totalorder %v67_v6, %v72_v2 }
  0x10   :  { %247 = vmatpush.msk.msra.mxu0 %vm88_vm0, %v351_v7  ;;  %vm84_vm4 = vcmp.le.s32.totalorder %v66_v8, %v72_v2  ;;  %vm83_vm5 = vcmp.le.s32.totalorder %v65_v9, %v72_v2  ;;  %vm82_vm6 = vcmp.le.s32.totalorder %v64_v10, %v72_v2  ;;  %v62_v12 = vadd.s32 56, %v55_v1 }
  0x11   :  { %vm81_vm7 = vcmp.le.s32.totalorder %v63_v11, %v72_v2  ;;  %v61_v13 = vadd.s32 48, %v55_v1  ;;  %v60_v14 = vadd.s32 40, %v55_v1  ;;  %v59_v15 = vadd.s32 32, %v55_v1 }
  0x12   :  { %248 = vmatpush.msk.msra.mxu0 %vm87_vm1, %v351_v7  ;;  %vm80_vm8 = vcmp.le.s32.totalorder %v62_v12, %v72_v2  ;;  %v58_v17 = vadd.s32 24, %v55_v1  ;;  %v52_v18 = vmul.f32 1.442695, %v50_v16  ;;  %v57_v19 = vadd.s32 16, %v55_v1 }
  0x13   :  { %vm79_vm9 = vcmp.le.s32.totalorder %v61_v13, %v72_v2  ;;  %vm78_vm10 = vcmp.le.s32.totalorder %v60_v14, %v72_v2  ;;  %vm77_vm11 = vcmp.le.s32.totalorder %v59_v15, %v72_v2  ;;  %v56_v20 = vadd.s32 8, %v55_v1 }
  0x14   :  { %249 = vmatpush.msk.msra.mxu0 %vm86_vm2, %v351_v7  ;;  %vm76_vm12 = vcmp.le.s32.totalorder %v58_v17, %v72_v2  ;;  %277 = vpow2.f32 %v52_v18  ;;  %vm75_vm13 = vcmp.le.s32.totalorder %v57_v19, %v72_v2  ;;  %vm73_vm15 = vcmp.le.s32.totalorder %v55_v1, %v72_v2 }
  0x15   :  { %vm74_vm14 = vcmp.le.s32.totalorder %v56_v20, %v72_v2  ;;  %vm147_vm0 = vcmask 1040384  }
  0x16   :  { %250 = vmatpush.msk.msra.mxu0 %vm85_vm3, %v351_v7  ;;  %v176_v29 = vsel %vm147_vm0, %v51_v25, 0.0 }
  0x18   :  { %251 = vmatpush.msk.msra.mxu0 %vm84_vm4, %v351_v7 }
  0x1a   :  { %252 = vmatpush.msk.msra.mxu0 %vm83_vm5, %v351_v7  ;;  %v278_v21 = vpop.eup %277 }
  0x1c   :  { %253 = vmatpush.msk.msra.mxu0 %vm82_vm6, %v351_v7 }
  0x1e   :  { %254 = vmatpush.msk.msra.mxu0 %vm81_vm7, %v351_v7 }
  0x20   :  { %255 = vmatpush.msk.msra.mxu0 %vm80_vm8, %v351_v7 }
  0x22   :  { %256 = vmatpush.msk.msra.mxu0 %vm79_vm9, %v351_v7 }
  0x24   :  { %257 = vmatpush.msk.msra.mxu0 %vm78_vm10, %v351_v7 }
  0x26   :  { %258 = vmatpush.msk.msra.mxu0 %vm77_vm11, %v351_v7 }
  0x28   :  { %259 = vmatpush.msk.msra.mxu0 %vm76_vm12, %v351_v7 }
  0x2a   :  { %260 = vmatpush.msk.msra.mxu0 %vm75_vm13, %v351_v7 }
  0x2c   :  { %261 = vmatpush.msk.msra.mxu0 %vm74_vm14, %v351_v7 }
  0x2e   :  { %262 = vmatpush.msk.msra.mxu0 %vm73_vm15, %v351_v7 }
  0x2f   :  { %139 = vmatmul.f32.vlgmr.msra.gmra.mxu0 %v278_v21 }
  0xac   :  { %v140_v22 = vpop.f32.mrf.mxu0 }
  0xad   :  { %279 = vlog2.f32 %v140_v22 }
  0xb3   :  { %v280_v23 = vpop.eup %279 }
  0xb4   :  { %v144_v24 = vmul.f32 0.6931472, %v280_v23 }
  0xb6   :  { %v145_v26 = vsub.f32 %v50_v16, %v144_v24 }
  0xb8   :  { %v146_v27 = vmul.f32 %v145_v26, %v51_v25 }
  0xba   :  { %v162_v28 = vsel %vm147_vm0, %v146_v27, 0.0 }
  0xbb   :  { %163 = vadd.xlane.f32.xlu0 %v162_v28 }
  0xc3   :  { %177 = vadd.xlane.f32.xlu0 %v176_v29 }
 0x12e   :  { %v164_v30 = vpop.xlane.xlu0 %163 }
 0x12f   :  { %v165_v31 = vrot.slane %v164_v30, 4 }
 0x131   :  { %v166_v32 = vadd.f32 %v165_v31, %v164_v30 }
 0x133   :  { %v167_v33 = vrot.slane %v166_v32, 2 }
 0x135   :  { %v168_v34 = vadd.f32 %v167_v33, %v166_v32 }
 0x136   :  { %v178_v35 = vpop.xlane.xlu0 %177 }
 0x137   :  { %v179_v36 = vrot.slane %v178_v35, 4  ;;  %v169_v37 = vrot.slane %v168_v34, 1 }
 0x139   :  { %v180_v38 = vadd.f32 %v179_v36, %v178_v35  ;;  %v170_v39 = vadd.f32 %v169_v37, %v168_v34 }
 0x13b   :  { %v181_v40 = vrot.slane %v180_v38, 2  ;;  %267 = vpush %v170_v39 }
 0x13d   :  { %v182_v41 = vadd.f32 %v181_v40, %v180_v38 }
 0x13f   :  { %v183_v42 = vrot.slane %v182_v41, 1 }
 0x141   :  { %v184_v43 = vadd.f32 %v183_v42, %v182_v41 }
 0x143   :  { %269 = vpush %v184_v43 }
 0x16c   :  { %s268_s0 = spop %267 }
 0x174   :  { %s270_s1 = spop %269 }
 0x175   :  { %v194_v44 = vstv %s270_s1 }
 0x176   :  { %281 = vrcp.f32 %v194_v44  ;;  %v206_v48 = vand.u32 2147483648, %v194_v44  ;;  %v204_v50 = vand.u32 2147483647, %v194_v44  ;;  %vm200_vm2 = vweird.f32 %v194_v44 }
 0x178   :  { %v207_v52 = vor.u32 1.1754944e-38, %v206_v48  ;;  %vm205_vm4 = vcmp.eq.f32.partialorder %v204_v50, 8.507059e+37 }
 0x17c   :  { %v282_v45 = vpop.eup %281 }
 0x17d   :  { %v196_v46 = vmul.f32 %v282_v45, %v194_v44  ;;  %vm201_vm1 = vweird.f32 %v282_v45 }
 0x17e   :  { %vm202_vm3 = vmor %vm200_vm2, %vm201_vm1 }
 0x17f   :  { %v197_v47 = vsub.f32 1.0, %v196_v46 }
 0x181   :  { %v198_v49 = vmul.f32 %v282_v45, %v197_v47 }
 0x183   :  { %v199_v51 = vadd.f32 %v282_v45, %v198_v49 }
 0x185   :  { %v203_v53 = vsel %vm202_vm3, %v282_v45, %v199_v51 }
 0x186   :  { %v208_v54 = vsel %vm205_vm4, %v207_v52, %v203_v53 }
 0x187   :  { %271 = vpush %v208_v54 }
 0x1b8   :  { %s272_s22 = spop %271 }
 0x1b9   :  { %s210_s23 = smul.f32 %s272_s22, %s268_s0 }
 0x1bb   :  { %s211_s24 = ssub.f32 0.0, %s210_s23 }
 0x1bd   :  { %213 = sst [smem:[#allocation8]] %s211_s24 }
 0x1be   :  { %222 = dma.smem_to_hbm %s352_s25, 16, %s220_s21, [#allocation5]  }
 0x1bf   :  { %347 = dma.done.wait [#allocation5], 16  }
 0x1c0   :  { %348 = vsyncadd [#allocation5], 4294967280 }
 0x1c1   :  { %227 = sfence }
 0x1c2   :  { %228 = vsyncpa [#allocation4], 1 }
 0x1c3   :  { %229 = vsyncpa [#allocation7], 1 }
 0x1c4   :  { %230 = vsyncpa [#allocation5], 1 }

</bundles_post_ra>
